<compile_context>
chip_gen: v7x
topology: tpu7x:2x2x1
jax: 0.10.0
libtpu: 0.0.40
codegen_flags: <defaults>
</compile_context>

<pallas_src>
import jax
import jax.numpy as jnp
from jax.experimental import pallas as pl
from jax.experimental.pallas import tpu as pltpu


def _round_up(n, m):
    return ((n + m - 1) // m) * m


def _make_kernel(compute_dtype):
    def kernel(x_ref, w1_ref, b1_ref, w2_ref, b2_ref, w3_ref, b3_ref, o_ref):
        # Shapes (feature-major): x_ref (IN, TB); w*_ref (out_f, in_f);
        # b*_ref (out_f, 1); o_ref (OUT, TB). Batch tile TB is on the lane axis.
        x = x_ref[...]
        h1 = jnp.dot(w1_ref[...], x, preferred_element_type=jnp.float32)
        h1 = jnp.maximum(h1 + b1_ref[...], 0.0)              # f32 epilogue (VPU)
        h2 = jnp.dot(w2_ref[...], h1.astype(compute_dtype),
                     preferred_element_type=jnp.float32)
        h2 = jnp.maximum(h2 + b2_ref[...], 0.0)
        out = jnp.dot(w3_ref[...], h2.astype(compute_dtype),
                      preferred_element_type=jnp.float32)
        o_ref[...] = (out + b3_ref[...]).astype(o_ref.dtype)
    return kernel


def evalnet_forward(x, params, *, tb_max=8192, compute_dtype=jnp.float32):
    """EvalNet forward.

    x: (B, in_size) float32.
    params: {'w1': (in,H), 'b1': (1,H), 'w2': (H,H), 'b2': (1,H),
             'w3': (H,OUT), 'b3': (1,OUT)}  (W stored as (in, out) = PyTorch W^T).
    Returns (B, OUT) float32.
    """
    w1, b1 = params["w1"], params["b1"]
    w2, b2 = params["w2"], params["b2"]
    w3, b3 = params["w3"], params["b3"]
    B, in_size = x.shape
    hidden = w1.shape[1]
    out_size = w3.shape[1]

    # ---- lane-dense / feature-major layout (wrapper-side layout plumbing) ----
    x_t = x.T.astype(compute_dtype)                 # (IN, B)   B on lane axis
    w1t = w1.T.astype(compute_dtype)                # (H, IN)
    w2t = w2.T.astype(compute_dtype)                # (H, H)
    w3t = w3.T.astype(compute_dtype)                # (OUT, H)
    b1t = b1.reshape(hidden, 1).astype(jnp.float32)
    b2t = b2.reshape(hidden, 1).astype(jnp.float32)
    b3t = b3.reshape(out_size, 1).astype(jnp.float32)

    # ---- batch tiling: multiple of 128 lanes, VMEM-safe on v5e/v6e/v7x ------
    tb = min(int(tb_max), _round_up(B, 128))
    b_pad = _round_up(B, tb)
    if b_pad != B:
        x_t = jnp.pad(x_t, ((0, 0), (0, b_pad - B)))
    grid = (b_pad // tb,)

    out_t = pl.pallas_call(
        _make_kernel(compute_dtype),
        out_shape=jax.ShapeDtypeStruct((out_size, b_pad), jnp.float32),
        grid=grid,
        in_specs=[
            # streamed (double-buffered by the Pallas pipeline):
            pl.BlockSpec((in_size, tb), lambda i: (0, i)),
            # VMEM-resident across all grid steps (constant index maps):
            pl.BlockSpec(w1t.shape, lambda i: (0, 0)),
            pl.BlockSpec(b1t.shape, lambda i: (0, 0)),
            pl.BlockSpec(w2t.shape, lambda i: (0, 0)),
            pl.BlockSpec(b2t.shape, lambda i: (0, 0)),
            pl.BlockSpec(w3t.shape, lambda i: (0, 0)),
            pl.BlockSpec(b3t.shape, lambda i: (0, 0)),
        ],
        out_specs=pl.BlockSpec((out_size, tb), lambda i: (0, i)),
        compiler_params=pltpu.CompilerParams(
            # v7x: shard the batch grid across both TensorCores; no-op on v5e/v6e.
            dimension_semantics=("parallel",),
        ),
    )(x_t, w1t, b1t, w2t, b2t, w3t, b3t)

    return out_t[:, :B].T


def init_params(key, in_size=9, hidden=64, out_size=7):
    """Deterministic synthetic init (uniform, PyTorch-Linear-like bounds)."""
    ks = jax.random.split(key, 6)

    def lin(kw, kb, fan_in, fan_out):
        bound = 1.0 / jnp.sqrt(fan_in)
        w = jax.random.uniform(kw, (fan_in, fan_out), jnp.float32, -bound, bound)
        b = jax.random.uniform(kb, (1, fan_out), jnp.float32, -bound, bound)
        return w, b

    w1, b1 = lin(ks[0], ks[1], in_size, hidden)
    w2, b2 = lin(ks[2], ks[3], hidden, hidden)
    w3, b3 = lin(ks[4], ks[5], hidden, out_size)
    return {"w1": w1, "b1": b1, "w2": w2, "b2": b2, "w3": w3, "b3": b3}


def evalnet_reference(x, p):
    h1 = jnp.maximum(x @ p["w1"] + p["b1"], 0.0)
    h2 = jnp.maximum(h1 @ p["w2"] + p["b2"], 0.0)
    return h2 @ p["w3"] + p["b3"]


if __name__ == "__main__":
    # TODO(synk): dropout (only active when dropout_rate is set; default None)
    # is not implemented — the default forward path is exactly reproduced.
    key = jax.random.PRNGKey(0)
    k_x, k_p, k_x2 = jax.random.split(key, 3)

    B, IN, HID, OUT = 8, 9, 64, 7
    x = jax.random.normal(k_x, (B, IN), dtype=jnp.float32)
    params = init_params(k_p, in_size=IN, hidden=HID, out_size=OUT)

    # Small-batch check (single grid step, batch padded to one 128-lane tile).
    out = jax.block_until_ready(evalnet_forward(x, params))
    ref = evalnet_reference(x, params)
    assert out.shape == (B, OUT), out.shape
    assert jnp.allclose(out, ref, atol=1e-4, rtol=1e-4), "mismatch vs reference (B=8)"

    # Multi-step grid check: exercises batch tiling, padding, resident weights.
    B2 = 384
    x2 = jax.random.normal(k_x2, (B2, IN), dtype=jnp.float32)
    out2 = jax.block_until_ready(evalnet_forward(x2, params, tb_max=256))
    ref2 = evalnet_reference(x2, params)
    assert out2.shape == (B2, OUT), out2.shape
    assert jnp.allclose(out2, ref2, atol=1e-4, rtol=1e-4), "mismatch vs reference (B=384)"

    print("KERNEL_OK")
</pallas_src>

<mosaic_0001>
module attributes {stable_mosaic.version = 11 : i64} {
  func.func @kernel(%arg0: i32, %arg1: memref<9x128xf32, #tpu.memory_space<vmem>>, %arg2: memref<64x9xf32, #tpu.memory_space<vmem>>, %arg3: memref<64x1xf32, #tpu.memory_space<vmem>>, %arg4: memref<64x64xf32, #tpu.memory_space<vmem>>, %arg5: memref<64x1xf32, #tpu.memory_space<vmem>>, %arg6: memref<7x64xf32, #tpu.memory_space<vmem>>, %arg7: memref<7x1xf32, #tpu.memory_space<vmem>>, %arg8: memref<7x128xf32, #tpu.memory_space<vmem>>) attributes {dimension_semantics = [#tpu.dimension_semantics<parallel>], iteration_bounds = array<i64: 1>, scalar_prefetch = 0 : i64, scratch_operands = 0 : i64, tpu.core_type = #tpu.core_type<tc>, window_params = [{transform_indices = @transform_0, window_bounds = array<i64: 9, 128>}, {pipeline_mode = #tpu.pipeline_mode<synchronous>, transform_indices = @transform_1, window_bounds = array<i64: 64, 9>}, {pipeline_mode = #tpu.pipeline_mode<synchronous>, transform_indices = @transform_2, window_bounds = array<i64: 64, 1>}, {pipeline_mode = #tpu.pipeline_mode<synchronous>, transform_indices = @transform_3, window_bounds = array<i64: 64, 64>}, {pipeline_mode = #tpu.pipeline_mode<synchronous>, transform_indices = @transform_4, window_bounds = array<i64: 64, 1>}, {pipeline_mode = #tpu.pipeline_mode<synchronous>, transform_indices = @transform_5, window_bounds = array<i64: 7, 64>}, {pipeline_mode = #tpu.pipeline_mode<synchronous>, transform_indices = @transform_6, window_bounds = array<i64: 7, 1>}, {transform_indices = @transform_7, window_bounds = array<i64: 7, 128>}]} {
    %c0 = arith.constant 0 : index
    %c0_0 = arith.constant 0 : index
    %0 = vector.load %arg1[%c0, %c0_0] : memref<9x128xf32, #tpu.memory_space<vmem>>, vector<9x128xf32>
    %c0_1 = arith.constant 0 : index
    %c0_2 = arith.constant 0 : index
    %1 = vector.load %arg2[%c0_1, %c0_2] : memref<64x9xf32, #tpu.memory_space<vmem>>, vector<64x9xf32>
    %cst = arith.constant dense<0.000000e+00> : vector<64x128xf32>
    %2 = tpu.matmul %1, %0, %cst {dimension_numbers = #tpu.dot_dimension_numbers<[1], [0], [0], [1], [0, 0, 1, 1], [], []>} : vector<64x9xf32>, vector<9x128xf32>, vector<64x128xf32> -> vector<64x128xf32>
    %c0_3 = arith.constant 0 : index
    %c0_4 = arith.constant 0 : index
    %3 = vector.load %arg3[%c0_3, %c0_4] : memref<64x1xf32, #tpu.memory_space<vmem>>, vector<64x1xf32>
    %4 = vector.broadcast %3 : vector<64x1xf32> to vector<64x128xf32>
    %5 = arith.addf %2, %4 : vector<64x128xf32>
    %cst_5 = arith.constant 0.000000e+00 : f32
    %6 = vector.broadcast %cst_5 : f32 to vector<64x128xf32>
    %7 = arith.maximumf %5, %6 : vector<64x128xf32>
    %c0_6 = arith.constant 0 : index
    %c0_7 = arith.constant 0 : index
    %8 = vector.load %arg4[%c0_6, %c0_7] : memref<64x64xf32, #tpu.memory_space<vmem>>, vector<64x64xf32>
    %cst_8 = arith.constant dense<0.000000e+00> : vector<64x128xf32>
    %9 = tpu.matmul %8, %7, %cst_8 {dimension_numbers = #tpu.dot_dimension_numbers<[1], [0], [0], [1], [0, 0, 1, 1], [], []>} : vector<64x64xf32>, vector<64x128xf32>, vector<64x128xf32> -> vector<64x128xf32>
    %c0_9 = arith.constant 0 : index
    %c0_10 = arith.constant 0 : index
    %10 = vector.load %arg5[%c0_9, %c0_10] : memref<64x1xf32, #tpu.memory_space<vmem>>, vector<64x1xf32>
    %11 = vector.broadcast %10 : vector<64x1xf32> to vector<64x128xf32>
    %12 = arith.addf %9, %11 : vector<64x128xf32>
    %cst_11 = arith.constant 0.000000e+00 : f32
    %13 = vector.broadcast %cst_11 : f32 to vector<64x128xf32>
    %14 = arith.maximumf %12, %13 : vector<64x128xf32>
    %c0_12 = arith.constant 0 : index
    %c0_13 = arith.constant 0 : index
    %15 = vector.load %arg6[%c0_12, %c0_13] : memref<7x64xf32, #tpu.memory_space<vmem>>, vector<7x64xf32>
    %cst_14 = arith.constant dense<0.000000e+00> : vector<7x128xf32>
    %16 = tpu.matmul %15, %14, %cst_14 {dimension_numbers = #tpu.dot_dimension_numbers<[1], [0], [0], [1], [0, 0, 1, 1], [], []>} : vector<7x64xf32>, vector<64x128xf32>, vector<7x128xf32> -> vector<7x128xf32>
    %c0_15 = arith.constant 0 : index
    %c0_16 = arith.constant 0 : index
    %17 = vector.load %arg7[%c0_15, %c0_16] : memref<7x1xf32, #tpu.memory_space<vmem>>, vector<7x1xf32>
    %18 = vector.broadcast %17 : vector<7x1xf32> to vector<7x128xf32>
    %19 = arith.addf %16, %18 : vector<7x128xf32>
    %c0_17 = arith.constant 0 : index
    %c0_18 = arith.constant 0 : index
    %20 = vector.load %arg8[%c0_17, %c0_18] : memref<7x128xf32, #tpu.memory_space<vmem>>, vector<7x128xf32>
    tpu.vector_store %arg8[%c0_17, %c0_18], %19 {strides = array<i32>} : memref<7x128xf32, #tpu.memory_space<vmem>>, vector<7x128xf32>,
    return
  }
  func.func @transform_0(%arg0: i32) -> (i32, i32) {
    %c0_i32 = arith.constant 0 : i32
    %c0_i32_0 = arith.constant 0 : i32
    return %c0_i32, %arg0 : i32, i32
  }
  func.func @transform_1(%arg0: i32) -> (i32, i32) {
    %c0_i32 = arith.constant 0 : i32
    %c0_i32_0 = arith.constant 0 : i32
    %c0_i32_1 = arith.constant 0 : i32
    return %c0_i32, %c0_i32_0 : i32, i32
  }
  func.func @transform_2(%arg0: i32) -> (i32, i32) {
    %c0_i32 = arith.constant 0 : i32
    %c0_i32_0 = arith.constant 0 : i32
    %c0_i32_1 = arith.constant 0 : i32
    return %c0_i32, %c0_i32_0 : i32, i32
  }
  func.func @transform_3(%arg0: i32) -> (i32, i32) {
    %c0_i32 = arith.constant 0 : i32
    %c0_i32_0 = arith.constant 0 : i32
    %c0_i32_1 = arith.constant 0 : i32
    return %c0_i32, %c0_i32_0 : i32, i32
  }
  func.func @transform_4(%arg0: i32) -> (i32, i32) {
    %c0_i32 = arith.constant 0 : i32
    %c0_i32_0 = arith.constant 0 : i32
    %c0_i32_1 = arith.constant 0 : i32
    return %c0_i32, %c0_i32_0 : i32, i32
  }
  func.func @transform_5(%arg0: i32) -> (i32, i32) {
    %c0_i32 = arith.constant 0 : i32
    %c0_i32_0 = arith.constant 0 : i32
    %c0_i32_1 = arith.constant 0 : i32
    return %c0_i32, %c0_i32_0 : i32, i32
  }
  func.func @transform_6(%arg0: i32) -> (i32, i32) {
    %c0_i32 = arith.constant 0 : i32
    %c0_i32_0 = arith.constant 0 : i32
    %c0_i32_1 = arith.constant 0 : i32
    return %c0_i32, %c0_i32_0 : i32, i32
  }
  func.func @transform_7(%arg0: i32) -> (i32, i32) {
    %c0_i32 = arith.constant 0 : i32
    %c0_i32_0 = arith.constant 0 : i32
    return %c0_i32, %arg0 : i32, i32
  }
}

</mosaic_0001>

<bundles_post_ra>
// kernel: tpu_custom_call.1
= control target key start
LH: loop header
LB: loop body
LE: loop exit
PB: predicated region body
PF: predicated region fallthrough
CT: control target
= control target key end

     0   :  { %vm110_vm0 = vcmask 1040384   ;;  %vm698_vm1 = vmmov 1   ;;  %vm85_vm3 = vcmask 72704   ;;  %v699_v4 = vmov 0   ;;  %s881_s0 = inlined_call_operand.vmem [shape: f32[9,128], index: 0, kind: input, shape index: {}]   ;;  %s882_s1 = inlined_call_operand.vmem [shape: f32[64,9], index: 1, kind: input, shape index: {}]   ;;  %s883_s2 = inlined_call_operand.vmem [shape: f32[64,1], index: 2, kind: input, shape index: {}]   ;;  %s884_s3 = inlined_call_operand.vmem [shape: f32[64,64], index: 3, kind: input, shape index: {}]   ;;  %s885_s4 = inlined_call_operand.vmem [shape: f32[64,1], index: 4, kind: input, shape index: {}]   ;;  %s886_s5 = inlined_call_operand.vmem [shape: f32[7,64], index: 5, kind: input, shape index: {}]   ;;  %s887_s6 = inlined_call_operand.vmem [shape: f32[7,1], index: 6, kind: input, shape index: {}]   ;;  %s888_s7 = inlined_call_operand.hbm [shape: f32[7,128], index: 7, kind: output, shape index: {}]  }
   0x1   :  { %v27_v0 = vld [vmem:[%s881_s0] sm:$0xff]  ;;  %v28_v1 = vld [vmem:[%s881_s0 + $0x8] sm:$0x1]  ;;  %vm633_vm2 = vmpackc.low %vm110_vm0, %vm698_vm1  ;;  %672 = vset.pattern.permute.xlu0 %v699_v4  ;;  %673 = vset.pattern.permute.xlu1 %v699_v4 }
   0x2   :  { %v29_v2 = vld [vmem:[%s882_s1] sm:$0xff]  ;;  %v632_v3 = vpack.c.bf16 %v28_v1, %v27_v0  ;;  %v30_v6 = vld [vmem:[%s882_s1 + $0x8] sm:$0xff]  ;;  %v39_v7 = vld [vmem:[%s883_s2 + $0x10] sm:$0xff] }
   0x3   :  { %573 = vmatprep.mubr.msk.f32.mxu0 %vm85_vm3, %v29_v2  ;;  %v37_v5 = vld [vmem:[%s883_s2] sm:$0xff]  ;;  %v31_v8 = vld [vmem:[%s882_s1 + $0x10] sm:$0xff]  ;;  %v38_v9 = vld [vmem:[%s883_s2 + $0x8] sm:$0xff]  ;;  %57 = vperm.xlu1 %673, %v39_v7  }
   0x4   :  { %634 = vmatprep.subr.msk.bf16.mxu0 %vm633_vm2, %v632_v3  ;;  %47 = vperm.xlu0 %672, %v37_v5   ;;  %v40_v10 = vld [vmem:[%s883_s2 + $0x18] sm:$0xff]  ;;  %v33_v12 = vld [vmem:[%s882_s1 + $0x20] sm:$0xff] }
   0x5   :  { %637 = vmatpush3.bf16.msk.msra.mxu0 %vm633_vm2, %v632_v3  ;;  %v32_v11 = vld [vmem:[%s882_s1 + $0x18] sm:$0xff]  ;;  %v41_v13 = vld [vmem:[%s883_s2 + $0x20] sm:$0xff] }
   0x7   :  { %62 = vperm.xlu1 %673, %v40_v10  }
   0x8   :  { %574 = vmatmul.mubr.msk.f32.vlgmr.msra.gmra.mrb[0].mxu0 %vm85_vm3, %v30_v6  ;;  %52 = vperm.xlu0 %672, %v38_v9  }
   0x9   :  { %576 = vmatprep.mubr.msk.f32.mxu0 %vm85_vm3, %v31_v8 }
   0xa   :  { %12 = vsyncpa [#allocation3], 0  ;;  %v42_v14 = vld [vmem:[%s883_s2 + $0x28] sm:$0xff]  ;;  %v35_v16 = vld [vmem:[%s882_s1 + $0x30] sm:$0xff]  ;;  %vm283_vm4 = vcmask 523264   ;;  %v700_v9 = vmov 0.0|0.0  }
   0xb   :  { %v34_v15 = vld [vmem:[%s882_s1 + $0x28] sm:$0xff]  ;;  %v43_v17 = vld [vmem:[%s883_s2 + $0x30] sm:$0xff]  ;;  %72 = vperm.xlu1 %673, %v42_v14   ;;  %v44_v18 = vld [vmem:[%s883_s2 + $0x38] sm:$0xff]  ;;  %654 = vmatprep.subr.bf16.mxu0 %v700_v9  ;;  %vm701_vm5 = vmmov 0   ;;  %v702_v10 = vmov 0.0  }
   0xc   :  { %577 = vmatmul.mubr.msk.f32.gmra.mrb[2].mxu0 %vm85_vm3, %v32_v11  ;;  %67 = vperm.xlu0 %672, %v41_v13   ;;  %v36_v19 = vld [vmem:[%s882_s1 + $0x38] sm:$0xff]  ;;  %v235_v20 = vld [vmem:[%s885_s4] sm:$0xff]  ;;  %v236_v21 = vld [vmem:[%s885_s4 + $0x8] sm:$0xff]  ;;  %s703_s1 = smov [#allocation2]  }
   0xd   :  { %579 = vmatprep.mubr.msk.f32.mxu0 %vm85_vm3, %v33_v12  ;;  %v237_v22 = vld [vmem:[%s885_s4 + $0x10] sm:$0xff]  ;;  %v238_v23 = vld [vmem:[%s885_s4 + $0x18] sm:$0xff]  ;;  %v239_v24 = vld [vmem:[%s885_s4 + $0x20] sm:$0xff]  ;;  %s508_s18 = sshll.u32 %s703_s1, 4  ;;  %s509_s18 = int_to_ptr.vmem [resolvable:$true] %s508_s18 }
   0xe   :  { %v240_v25 = vld [vmem:[%s885_s4 + $0x28] sm:$0xff]  ;;  %v241_v26 = vld [vmem:[%s885_s4 + $0x30] sm:$0xff]  ;;  %v242_v27 = vld [vmem:[%s885_s4 + $0x38] sm:$0xff]  ;;  %s674_s19 = scalar_lea.vmem %s509_s18, 128  ;;  %p679_p1 = scmp.lt.s32.totalorder %s509_s18, %s509_s18 }
   0xf   :  { %82 = vperm.xlu1 %673, %v44_v18   ;;  %v422_v28 = vld [vmem:[%s887_s6] sm:$0x7f]  ;;  %v228_v2 = vld [vmem:[%s884_s3 + $0x8] sm:$0xff]  ;;  %v229_v3 = vld [vmem:[%s884_s3 + $0x10] sm:$0xff]  ;;  %p675_p0 = scmp.ne.s32.totalorder %s509_s18, %s674_s19  ;;  %p680_p2 = scmp.lt.s32.totalorder %s674_s19, %s674_s19 }
  0x10   :  { %580 = vmatmul.mubr.msk.f32.gmra.mrb[4].mxu0 %vm85_vm3, %v34_v15  ;;  %77 = vperm.xlu0 %672, %v43_v17   ;;  %v227_v29 = vld [vmem:[%s884_s3] sm:$0xff]  ;;  %v230_v4 = vld [vmem:[%s884_s3 + $0x18] sm:$0xff]  ;;  %v232_v6 = vld [vmem:[%s884_s3 + $0x28] sm:$0xff] }
  0x11   :  { %582 = vmatprep.mubr.msk.f32.mxu0 %vm85_vm3, %v35_v16  ;;  %601 = vmatprep.mubr.msk.f32.mxu1 %vm283_vm4, %v227_v29  ;;  %v231_v5 = vld [vmem:[%s884_s3 + $0x20] sm:$0xff]  ;;  %v233_v7 = vld [vmem:[%s884_s3 + $0x30] sm:$0xff]  ;;  %v234_v8 = vld [vmem:[%s884_s3 + $0x38] sm:$0xff]  ;;  %p681_p3 = por %p680_p2, %p679_p1 }
  0x13   :  { %250 = vperm.xlu1 %673, %v236_v21   ;;  %p682_p4 = pnand %p681_p3, %p675_p0 }
  0x14   :  { %583 = vmatmul.mubr.msk.f32.gmra.mrb[6].mxu0 %vm85_vm3, %v36_v19  ;;  %245 = vperm.xlu0 %672, %v235_v20  }
  0x15   :  { %629 = vmatprep.mubr.msk.f32.mxu0 %vm701_vm5, %v702_v10 }
  0x17   :  { %260 = vperm.xlu1 %673, %v238_v23  }
  0x18   :  { %255 = vperm.xlu0 %672, %v237_v22  }
  0x1b   :  { %270 = vperm.xlu1 %673, %v240_v25  }
  0x1c   :  { %265 = vperm.xlu0 %672, %v239_v24  }
  0x1f   :  { %280 = vperm.xlu1 %673, %v242_v27  }
  0x20   :  { %275 = vperm.xlu0 %672, %v241_v26  }
  0x24   :  { %425 = vperm.xlu0 %672, %v422_v28  }
  0x82   :  { %v58_v31 = vpop.permute.xlu1 %57 }
  0x83   :  { %v48_v30 = vpop.permute.xlu0 %47 }
  0x86   :  { %v63_v33 = vpop.permute.xlu1 %62 }
  0x87   :  { %v53_v32 = vpop.permute.xlu0 %52 }
  0x8a   :  { %v73_v43 = vpop.permute.xlu1 %72 }
  0x8b   :  { %v68_v46 = vpop.permute.xlu0 %67 }
  0x8e   :  { %v83_v55 = vpop.permute.xlu1 %82 }
  0x8f   :  { %v78_v58 = vpop.permute.xlu0 %77 }
  0x92   :  { %v251_v11 = vpop.permute.xlu1 %250 }
  0x93   :  { %v246_v12 = vpop.permute.xlu0 %245 }
  0x96   :  { %v261_v13 = vpop.permute.xlu1 %260 }
  0x97   :  { %v256_v15 = vpop.permute.xlu0 %255 }
  0x9a   :  { %v271_v24 = vpop.permute.xlu1 %270 }
  0x9b   :  { %v266_v27 = vpop.permute.xlu0 %265 }
  0xdb   :  { %v575_v34 = vpop.f32.mrb[0].mxu0 }
  0xdc   :  { %v186_v35 = vadd.f32 %v575_v34, %v53_v32  ;;  %v180_v36 = vpop.f32.mrb[1].mxu0 }
  0xdd   :  { %v181_v37 = vadd.f32 %v180_v36, %v48_v30  ;;  %v281_v36 = vpop.permute.xlu1 %280 }
  0xde   :  { %v220_v38 = vmax.f32 %v186_v35, 0.0 }
  0xdf   :  { %v219_v39 = vmax.f32 %v181_v37, 0.0  ;;  %v578_v40 = vpop.f32.mrb[2].mxu0 }
  0xe0   :  { %v196_v41 = vadd.f32 %v578_v40, %v63_v33  ;;  %v190_v42 = vpop.f32.mrb[3].mxu0 }
  0xe1   :  { %v191_v44 = vadd.f32 %v190_v42, %v58_v31  ;;  %v638_v45 = vpack.c.bf16 %v220_v38, %v219_v39  ;;  %v276_v39 = vpop.permute.xlu0 %275 }
  0xe2   :  { %v222_v47 = vmax.f32 %v196_v41, 0.0 }
  0xe3   :  { %v221_v48 = vmax.f32 %v191_v44, 0.0  ;;  %v581_v49 = vpop.f32.mrb[4].mxu0  ;;  %639 = vmatprep.subr.bf16.mxu1 %v638_v45 }
  0xe4   :  { %v206_v50 = vadd.f32 %v581_v49, %v73_v43  ;;  %v200_v51 = vpop.f32.mrb[5].mxu0  ;;  %641 = vmatpush3.bf16.msra.mxu1 %v638_v45 }
  0xe5   :  { %v642_v52 = vpack.c.bf16 %v222_v47, %v221_v48  ;;  %v201_v53 = vadd.f32 %v200_v51, %v68_v46  ;;  %v421_v47 = vld [vmem:[%s886_s5] sm:$0x7f]  ;;  %v426_v48 = vpop.permute.xlu0 %425 }
  0xe6   :  { %v224_v54 = vmax.f32 %v206_v50, 0.0 }
  0xe7   :  { %v223_v56 = vmax.f32 %v201_v53, 0.0  ;;  %v584_v57 = vpop.f32.mrb[6].mxu0  ;;  %643 = vmatprep.subr.bf16.mxu1 %v642_v52 }
  0xe8   :  { %v216_v59 = vadd.f32 %v584_v57, %v83_v55  ;;  %v210_v60 = vpop.f32.mrb[7].mxu0  ;;  %645 = vmatpush3.bf16.msra.mxu1 %v642_v52 }
  0xe9   :  { %v646_v61 = vpack.c.bf16 %v224_v54, %v223_v56  ;;  %v211_v62 = vadd.f32 %v210_v60, %v78_v58 }
  0xea   :  { %v226_v63 = vmax.f32 %v216_v59, 0.0 }
  0xeb   :  { %v225_v0 = vmax.f32 %v211_v62, 0.0  ;;  %647 = vmatprep.subr.bf16.mxu1 %v646_v61 }
  0xec   :  { %649 = vmatpush3.bf16.msra.mxu1 %v646_v61 }
  0xed   :  { %v650_v1 = vpack.c.bf16 %v226_v63, %v225_v0 }
  0xef   :  { %651 = vmatprep.subr.bf16.mxu1 %v650_v1 }
  0xf0   :  { %653 = vmatpush3.bf16.msra.mxu1 %v650_v1 }
  0xf3   :  { %602 = vmatmul.mubr.msk.f32.vlgmr.msra.gmra.mrb[0].mxu1 %vm283_vm4, %v228_v2 }
  0xf4   :  { %604 = vmatprep.mubr.msk.f32.mxu1 %vm283_vm4, %v229_v3 }
  0xf7   :  { %605 = vmatmul.mubr.msk.f32.gmra.mrb[2].mxu1 %vm283_vm4, %v230_v4 }
  0xf8   :  { %607 = vmatprep.mubr.msk.f32.mxu1 %vm283_vm4, %v231_v5 }
  0xfb   :  { %608 = vmatmul.mubr.msk.f32.gmra.mrb[4].mxu1 %vm283_vm4, %v232_v6 }
  0xfc   :  { %610 = vmatprep.mubr.msk.f32.mxu1 %vm283_vm4, %v233_v7 }
  0xff   :  { %611 = vmatmul.mubr.msk.f32.gmra.mrb[6].mxu1 %vm283_vm4, %v234_v8 }
 0x1c6   :  { %v603_v14 = vpop.f32.mrb[0].mxu1 }
 0x1c7   :  { %v380_v16 = vadd.f32 %v603_v14, %v251_v11  ;;  %v374_v17 = vpop.f32.mrb[1].mxu1 }
 0x1c8   :  { %v375_v18 = vadd.f32 %v374_v17, %v246_v12 }
 0x1c9   :  { %v414_v19 = vmax.f32 %v380_v16, 0.0 }
 0x1ca   :  { %v413_v20 = vmax.f32 %v375_v18, 0.0  ;;  %v606_v21 = vpop.f32.mrb[2].mxu1 }
 0x1cb   :  { %v390_v22 = vadd.f32 %v606_v21, %v261_v13  ;;  %v384_v23 = vpop.f32.mrb[3].mxu1 }
 0x1cc   :  { %v655_v25 = vpack.c.bf16 %v414_v19, %v413_v20  ;;  %v385_v26 = vadd.f32 %v384_v23, %v256_v15 }
 0x1cd   :  { %v416_v28 = vmax.f32 %v390_v22, 0.0 }
 0x1ce   :  { %v415_v29 = vmax.f32 %v385_v26, 0.0  ;;  %v609_v30 = vpop.f32.mrb[4].mxu1  ;;  %656 = vmatpush3.bf16.msra.mxu0 %v655_v25 }
 0x1cf   :  { %v400_v31 = vadd.f32 %v609_v30, %v271_v24  ;;  %v394_v32 = vpop.f32.mrb[5].mxu1  ;;  %657 = vmatprep.subr.bf16.mxu0 %v700_v9 }
 0x1d0   :  { %v658_v33 = vpack.c.bf16 %v416_v28, %v415_v29  ;;  %v395_v34 = vadd.f32 %v394_v32, %v266_v27 }
 0x1d1   :  { %v418_v35 = vmax.f32 %v400_v31, 0.0 }
 0x1d2   :  { %v417_v37 = vmax.f32 %v395_v34, 0.0  ;;  %v612_v38 = vpop.f32.mrb[6].mxu1  ;;  %659 = vmatpush3.bf16.msra.mxu0 %v658_v33 }
 0x1d3   :  { %v410_v40 = vadd.f32 %v612_v38, %v281_v36  ;;  %v404_v41 = vpop.f32.mrb[7].mxu1  ;;  %660 = vmatprep.subr.bf16.mxu0 %v700_v9 }
 0x1d4   :  { %v661_v42 = vpack.c.bf16 %v418_v35, %v417_v37  ;;  %v405_v43 = vadd.f32 %v404_v41, %v276_v39 }
 0x1d5   :  { %v420_v44 = vmax.f32 %v410_v40, 0.0 }
 0x1d6   :  { %v419_v45 = vmax.f32 %v405_v43, 0.0  ;;  %662 = vmatpush3.bf16.msra.mxu0 %v661_v42 }
 0x1d7   :  { %663 = vmatprep.subr.bf16.mxu0 %v700_v9 }
 0x1d8   :  { %v664_v46 = vpack.c.bf16 %v420_v44, %v419_v45 }
 0x1da   :  { %665 = vmatpush3.bf16.msra.mxu0 %v664_v46 }
 0x1dd   :  { %630 = vmatmul.mubr.msk.f32.vlgmr.msra.gmra.mrb[8].mxu0 %vm283_vm4, %v421_v47 }
 0x2b0   :  { %v497_v49 = vpop.f32.mrb[8].mxu0 }
 0x2b1   :  { %v498_v50 = vadd.f32 %v497_v49, %v426_v48  ;;  %v631_v51 = vpop.f32.mrb[9].mxu0 }
 0x2b3   :  { %501 = vst [vmem:[#allocation2] sm:$0x7f] %v498_v50 }
 0x2b4   :  { %685 = shalt.err (!%p682_p4)
}
 0x2b5   :  { %s686_s5 = scalar_lea.hbm %s888_s7, 128 }
 0x2b6   :  { %p687_p5 = scmp.ne.s32.totalorder %s888_s7, %s686_s5  ;;  %p690_p6 = scmp.lt.u32.totalorder %s686_s5, %s888_s7 }
 0x2b8   :  { %p692_p7 = pnand %p690_p6, %p687_p5 }
 0x2ba   :  { %695 = shalt.err (!%p692_p7)
}
 0x2bb   :  { %511 = dma.vmem_to_hbm [thread:$0]  %s509_s18, 128, %s888_s7, [#allocation3]  }
 0x2bc   :  { %696 = dma.done.wait [#allocation3], 128  }
 0x2bd   :  { %697 = vsyncadd [#allocation3], 4294967168 }
 0x2be   :  { %515 = vsyncpa [#allocation3], 1 }

</bundles_post_ra>
